<compile_context>
chip_gen: v6e
topology: v6e:2x2x1
jax: 0.10.0
libtpu: 0.0.40
codegen_flags: <defaults>
</compile_context>

<pallas_src>
import functools

import jax
import jax.numpy as jnp
import numpy as np
from jax.experimental import pallas as pl
from jax.experimental.pallas import tpu as pltpu


def _sum_all(x):
    """Full reduction of a 2-D tile to shape (1, 1) (lane then sublane)."""
    return jnp.sum(jnp.sum(x, axis=-1, keepdims=True), axis=0, keepdims=True)


def _myloss_kernel(p_ref, t_ref, bs_ref, o_ref, *, sigma):
    # p_ref / t_ref: (3, B, 3) f32 in VMEM  (point index on the leading axis)
    # bs_ref:        (1,) f32 in SMEM       (batchsize)
    # o_ref:         (1, 1) f32 in VMEM     (scalar loss)
    p1 = p_ref[0]            # (B, 3)
    p2 = p_ref[1]
    p3 = p_ref[2]
    t1 = t_ref[0]
    t2 = t_ref[1]
    t3 = t_ref[2]

    inv_sigma2 = jnp.float32(1.0 / (sigma * sigma))

    # --- distance terms -----------------------------------------------------
    # (abstand(g)/sigma)^2 == sum((p_g - t_g)^2) / sigma^2 ; summing the three
    # groups together equals one global sum over all 9 coordinates.
    d1 = p1 - t1
    d2 = p2 - t2
    d3 = p3 - t3
    dist_sum = _sum_all(d1 * d1 + d2 * d2 + d3 * d3)          # (1, 1)
    dist_term = dist_sum * inv_sigma2

    # --- collinearity term ----------------------------------------------------
    v1 = p2 - p1                                              # (B, 3)
    v2 = p3 - p2                                              # (B, 3)
    n1 = _sum_all(v1 * v1)                                    # (1, 1)
    n2 = _sum_all(v2 * v2)                                    # (1, 1)
    z = jnp.sqrt(n1) * jnp.sqrt(n2)                           # (1, 1)
    # torch: `if z == 0: z = 0.0001` (data-dependent branch -> select)
    z = jnp.where(z == 0.0, jnp.float32(1e-4), z)
    corr = jnp.abs(_sum_all((v1 * v2) ** 2) / z)              # (1, 1)

    l = dist_term + jnp.abs(1.0 - corr) ** 2                  # (1, 1)
    o_ref[...] = l / bs_ref[0]


def my_loss(p, t, batchsize, *, sigma):
    """Pallas MyLoss.  p, t: (B, 9) float arrays.  Returns a f32 scalar."""
    b = p.shape[0]
    assert p.shape == (b, 9) and t.shape == (b, 9)

    # (B, 9) -> (3, B, 3): the three 3-D points go on the (untiled) leading
    # axis so the kernel never slices along the lane dimension.
    p_pts = jnp.transpose(p.reshape(b, 3, 3), (1, 0, 2)).astype(jnp.float32)
    t_pts = jnp.transpose(t.reshape(b, 3, 3), (1, 0, 2)).astype(jnp.float32)
    bs = jnp.asarray(batchsize, jnp.float32).reshape((1,))

    out = pl.pallas_call(
        functools.partial(_myloss_kernel, sigma=float(sigma)),
        out_shape=jax.ShapeDtypeStruct((1, 1), jnp.float32),
        in_specs=[
            pl.BlockSpec(memory_space=pltpu.MemorySpace.VMEM),   # p (3, B, 3)
            pl.BlockSpec(memory_space=pltpu.MemorySpace.VMEM),   # t (3, B, 3)
            pl.BlockSpec(memory_space=pltpu.MemorySpace.SMEM),   # batchsize (1,)
        ],
        out_specs=pl.BlockSpec(memory_space=pltpu.MemorySpace.VMEM),
    )(p_pts, t_pts, bs)
    return out[0, 0]


def _reference_loss(p, t, batchsize, sigma):
    """Pure-JAX mirror of the torch code, for correctness checking."""
    def abstand(a, b):
        return jnp.sqrt(jnp.sum((a - b) ** 2))

    def collinear(p1, p2, p3):
        v1 = p2 - p1
        v2 = p3 - p2
        z = jnp.sqrt(jnp.sum(v1 ** 2)) * jnp.sqrt(jnp.sum(v2 ** 2))
        z = jnp.where(z == 0.0, 1e-4, z)
        return jnp.abs(jnp.sum((v1 * v2) ** 2) / z)

    l = (abstand(p[:, :3], t[:, :3]) / sigma) ** 2 \
        + (abstand(p[:, 3:6], t[:, 3:6]) / sigma) ** 2 \
        + (abstand(p[:, 6:], t[:, 6:]) / sigma) ** 2 \
        + jnp.abs(1.0 - collinear(p[:, :3], p[:, 3:6], p[:, 6:])) ** 2
    return l / batchsize


if __name__ == "__main__":
    key = jax.random.PRNGKey(0)
    kp, kt = jax.random.split(key)

    batch = 8
    sigma = 0.5
    p = jax.random.normal(kp, (batch, 9), jnp.float32)
    t = jax.random.normal(kt, (batch, 9), jnp.float32)

    loss_fn = jax.jit(functools.partial(my_loss, sigma=sigma))
    loss = loss_fn(p, t, jnp.float32(batch))
    jax.block_until_ready(loss)

    ref = _reference_loss(p, t, float(batch), sigma)
    assert loss.shape == ()
    np.testing.assert_allclose(np.asarray(loss), np.asarray(ref),
                               rtol=1e-4, atol=1e-6)
    print("KERNEL_OK")
</pallas_src>

<mosaic_0001>
module attributes {stable_mosaic.version = 11 : i64} {
  func.func @_myloss_kernel(%arg0: memref<3x8x3xf32, #tpu.memory_space<vmem>>, %arg1: memref<3x8x3xf32, #tpu.memory_space<vmem>>, %arg2: memref<1xf32, #tpu.memory_space<smem>>, %arg3: memref<1x1xf32, #tpu.memory_space<vmem>>) attributes {dimension_semantics = [], scalar_prefetch = 0 : i64, scratch_operands = 0 : i64, tpu.core_type = #tpu.core_type<tc>} {
    %c0 = arith.constant 0 : index
    %c0_0 = arith.constant 0 : index
    %c0_1 = arith.constant 0 : index
    %0 = vector.load %arg0[%c0, %c0_0, %c0_1] : memref<3x8x3xf32, #tpu.memory_space<vmem>>, vector<1x8x3xf32>
    %1 = vector.shape_cast %0 : vector<1x8x3xf32> to vector<8x3xf32>
    %c1 = arith.constant 1 : index
    %c0_2 = arith.constant 0 : index
    %c0_3 = arith.constant 0 : index
    %2 = vector.load %arg0[%c1, %c0_2, %c0_3] : memref<3x8x3xf32, #tpu.memory_space<vmem>>, vector<1x8x3xf32>
    %3 = vector.shape_cast %2 : vector<1x8x3xf32> to vector<8x3xf32>
    %c2 = arith.constant 2 : index
    %c0_4 = arith.constant 0 : index
    %c0_5 = arith.constant 0 : index
    %4 = vector.load %arg0[%c2, %c0_4, %c0_5] : memref<3x8x3xf32, #tpu.memory_space<vmem>>, vector<1x8x3xf32>
    %5 = vector.shape_cast %4 : vector<1x8x3xf32> to vector<8x3xf32>
    %c0_6 = arith.constant 0 : index
    %c0_7 = arith.constant 0 : index
    %c0_8 = arith.constant 0 : index
    %6 = vector.load %arg1[%c0_6, %c0_7, %c0_8] : memref<3x8x3xf32, #tpu.memory_space<vmem>>, vector<1x8x3xf32>
    %7 = vector.shape_cast %6 : vector<1x8x3xf32> to vector<8x3xf32>
    %c1_9 = arith.constant 1 : index
    %c0_10 = arith.constant 0 : index
    %c0_11 = arith.constant 0 : index
    %8 = vector.load %arg1[%c1_9, %c0_10, %c0_11] : memref<3x8x3xf32, #tpu.memory_space<vmem>>, vector<1x8x3xf32>
    %9 = vector.shape_cast %8 : vector<1x8x3xf32> to vector<8x3xf32>
    %c2_12 = arith.constant 2 : index
    %c0_13 = arith.constant 0 : index
    %c0_14 = arith.constant 0 : index
    %10 = vector.load %arg1[%c2_12, %c0_13, %c0_14] : memref<3x8x3xf32, #tpu.memory_space<vmem>>, vector<1x8x3xf32>
    %11 = vector.shape_cast %10 : vector<1x8x3xf32> to vector<8x3xf32>
    %12 = arith.subf %1, %7 : vector<8x3xf32>
    %13 = arith.subf %3, %9 : vector<8x3xf32>
    %14 = arith.subf %5, %11 : vector<8x3xf32>
    %15 = arith.mulf %12, %12 : vector<8x3xf32>
    %16 = arith.mulf %13, %13 : vector<8x3xf32>
    %17 = arith.addf %15, %16 : vector<8x3xf32>
    %18 = arith.mulf %14, %14 : vector<8x3xf32>
    %19 = arith.addf %17, %18 : vector<8x3xf32>
    %cst = arith.constant dense<0.000000e+00> : vector<8xf32>
    %20 = vector.multi_reduction <add>, %19, %cst [1] : vector<8x3xf32> to vector<8xf32>
    %21 = vector.shape_cast %20 : vector<8xf32> to vector<8x1xf32>
    %cst_15 = arith.constant dense<0.000000e+00> : vector<1xf32>
    %22 = vector.multi_reduction <add>, %21, %cst_15 [0] : vector<8x1xf32> to vector<1xf32>
    %23 = vector.shape_cast %22 : vector<1xf32> to vector<1x1xf32>
    %cst_16 = arith.constant 4.000000e+00 : f32
    %24 = vector.broadcast %cst_16 : f32 to vector<1x1xf32>
    %25 = arith.mulf %23, %24 : vector<1x1xf32>
    %26 = arith.subf %3, %1 : vector<8x3xf32>
    %27 = arith.subf %5, %3 : vector<8x3xf32>
    %28 = arith.mulf %26, %26 : vector<8x3xf32>
    %cst_17 = arith.constant dense<0.000000e+00> : vector<8xf32>
    %29 = vector.multi_reduction <add>, %28, %cst_17 [1] : vector<8x3xf32> to vector<8xf32>
    %30 = vector.shape_cast %29 : vector<8xf32> to vector<8x1xf32>
    %cst_18 = arith.constant dense<0.000000e+00> : vector<1xf32>
    %31 = vector.multi_reduction <add>, %30, %cst_18 [0] : vector<8x1xf32> to vector<1xf32>
    %32 = vector.shape_cast %31 : vector<1xf32> to vector<1x1xf32>
    %33 = arith.mulf %27, %27 : vector<8x3xf32>
    %cst_19 = arith.constant dense<0.000000e+00> : vector<8xf32>
    %34 = vector.multi_reduction <add>, %33, %cst_19 [1] : vector<8x3xf32> to vector<8xf32>
    %35 = vector.shape_cast %34 : vector<8xf32> to vector<8x1xf32>
    %cst_20 = arith.constant dense<0.000000e+00> : vector<1xf32>
    %36 = vector.multi_reduction <add>, %35, %cst_20 [0] : vector<8x1xf32> to vector<1xf32>
    %37 = vector.shape_cast %36 : vector<1xf32> to vector<1x1xf32>
    %38 = math.sqrt %32 : vector<1x1xf32>
    %39 = math.sqrt %37 : vector<1x1xf32>
    %40 = arith.mulf %38, %39 : vector<1x1xf32>
    %cst_21 = arith.constant 0.000000e+00 : f32
    %41 = vector.broadcast %cst_21 : f32 to vector<1x1xf32>
    %42 = arith.cmpf oeq, %40, %41 : vector<1x1xf32>
    %cst_22 = arith.constant 9.99999974E-5 : f32
    %43 = vector.broadcast %cst_22 : f32 to vector<1x1xf32>
    %44 = arith.select %42, %43, %40 : vector<1x1xi1>, vector<1x1xf32>
    %45 = arith.mulf %26, %27 : vector<8x3xf32>
    %46 = arith.mulf %45, %45 : vector<8x3xf32>
    %cst_23 = arith.constant dense<0.000000e+00> : vector<8xf32>
    %47 = vector.multi_reduction <add>, %46, %cst_23 [1] : vector<8x3xf32> to vector<8xf32>
    %48 = vector.shape_cast %47 : vector<8xf32> to vector<8x1xf32>
    %cst_24 = arith.constant dense<0.000000e+00> : vector<1xf32>
    %49 = vector.multi_reduction <add>, %48, %cst_24 [0] : vector<8x1xf32> to vector<1xf32>
    %50 = vector.shape_cast %49 : vector<1xf32> to vector<1x1xf32>
    %51 = arith.divf %50, %44 : vector<1x1xf32>
    %52 = math.absf %51 : vector<1x1xf32>
    %cst_25 = arith.constant 1.000000e+00 : f32
    %53 = vector.broadcast %cst_25 : f32 to vector<1x1xf32>
    %54 = arith.subf %53, %52 : vector<1x1xf32>
    %55 = math.absf %54 : vector<1x1xf32>
    %56 = arith.mulf %55, %55 : vector<1x1xf32>
    %57 = arith.addf %25, %56 : vector<1x1xf32>
    %c0_26 = arith.constant 0 : index
    %58 = memref.load %arg2[%c0_26] : memref<1xf32, #tpu.memory_space<smem>>
    %59 = vector.broadcast %58 : f32 to vector<1x1xf32>
    %60 = arith.divf %57, %59 : vector<1x1xf32>
    %c0_27 = arith.constant 0 : index
    %c0_28 = arith.constant 0 : index
    %61 = vector.load %arg3[%c0_27, %c0_28] : memref<1x1xf32, #tpu.memory_space<vmem>>, vector<1x1xf32>
    tpu.vector_store %arg3[%c0_27, %c0_28], %60 {strides = array<i32>} : memref<1x1xf32, #tpu.memory_space<vmem>>, vector<1x1xf32>,
    return
  }
}

</mosaic_0001>

<bundles_post_ra>
// kernel: my_loss.1
= control target key start
LH: loop header
LB: loop body
LE: loop exit
PB: predicated region body
PF: predicated region fallthrough
CT: control target
= control target key end

     0   :  { %vm34_vm0 = vcmask 23552   ;;  %s206_s0 = inlined_call_operand.vmem [shape: f32[3,8,3], index: 0, kind: input, shape index: {}]   ;;  %s207_s1 = inlined_call_operand.vmem [shape: f32[3,8,3], index: 1, kind: input, shape index: {}]   ;;  %s208_s2 = inlined_call_operand.<no memory space> [shape: f32[1], index: 2, kind: input, shape index: {}]   ;;  %s209_s3 = inlined_call_operand.hbm [shape: f32[1,1], index: 3, kind: output, shape index: {}]  }
   0x1   :  { %v16_v0 = vld [vmem:[%s206_s0] sm:$0xff]  ;;  %v122_v1 = vld [vmem:[%s206_s0 + $0x8] sm:$0xff]  ;;  %v123_v5 = vld [vmem:[%s206_s0 + $0x10] sm:$0xff] }
   0x2   :  { %v21_v2 = vld [vmem:[%s207_s1] sm:$0xff]  ;;  %v45_v3 = vsub.f32 %v122_v1, %v16_v0  ;;  %v124_v6 = vld [vmem:[%s207_s1 + $0x8] sm:$0xff]  ;;  %v125_v7 = vld [vmem:[%s207_s1 + $0x10] sm:$0xff]  ;;  %v46_v8 = vsub.f32 %v123_v5, %v122_v1 }
   0x3   :  { %v26_v4 = vsub.f32 %v16_v0, %v21_v2  ;;  %v27_v9 = vsub.f32 %v122_v1, %v124_v6  ;;  %v28_v10 = vsub.f32 %v123_v5, %v125_v7 }
   0x4   :  { %9 = vsyncpa [#allocation4], 0  ;;  %v47_v11 = vmul.f32 %v45_v3, %v45_v3  ;;  %v57_v13 = vmul.f32 %v46_v8, %v46_v8  ;;  %v84_v14 = vmul.f32 %v46_v8, %v45_v3  ;;  %v103_v59 = vstv %s208_s2  ;;  %s157_s24 = smov [#allocation3]  }
   0x5   :  { %v29_v12 = vmul.f32 %v26_v4, %v26_v4  ;;  %v30_v15 = vmul.f32 %v27_v9, %v27_v9  ;;  %v32_v16 = vmul.f32 %v28_v10, %v28_v10  ;;  %s114_s25 = sshll.u32 %s157_s24, 4  ;;  %vm106_vm6 = vcmask 0   ;;  %s115_s25 = int_to_ptr.vmem [resolvable:$true] %s114_s25 }
   0x6   :  { %v48_v17 = vsel %vm34_vm0, %v47_v11, 0.0  ;;  %v85_v18 = vmul.f32 %v84_v14, %v84_v14  ;;  %v58_v20 = vsel %vm34_vm0, %v57_v13, 0.0  ;;  %s135_s2 = scalar_lea.vmem %s115_s25, 16  ;;  %s139_s26 = scalar_lea.vmem %s115_s25, 32 }
   0x7   :  { %49 = vadd.xlane.f32.xlu0 %v48_v17  ;;  %v31_v19 = vadd.f32 %v30_v15, %v29_v12  ;;  %p136_p0 = scmp.ne.s32.totalorder %s115_s25, %s135_s2  ;;  %p140_p1 = scmp.lt.s32.totalorder %s115_s25, %s115_s25 }
   0x8   :  { %v86_v21 = vsel %vm34_vm0, %v85_v18, 0.0  ;;  %p141_p2 = scmp.lt.s32.totalorder %s139_s26, %s135_s2 }
   0x9   :  { %v33_v22 = vadd.f32 %v32_v16, %v31_v19  ;;  %87 = vadd.xlane.f32.xlu1 %v86_v21 }
   0xa   :  { %p142_p3 = por %p141_p2, %p140_p1 }
   0xb   :  { %59 = vadd.xlane.f32.xlu0 %v58_v20  ;;  %v35_v23 = vsel %vm34_vm0, %v33_v22, 0.0 }
   0xc   :  { %p143_p4 = pnand %p142_p3, %p136_p0 }
   0xd   :  { %36 = vadd.xlane.f32.xlu1 %v35_v23 }
  0x90   :  { %v50_v24 = vpop.xlane.xlu0 %49 }
  0x91   :  { %v51_v25 = vrot.slane %v50_v24, 4 }
  0x92   :  { %v88_v40 = vpop.xlane.xlu1 %87 }
  0x93   :  { %v52_v26 = vadd.f32 %v51_v25, %v50_v24  ;;  %v89_v44 = vrot.slane %v88_v40, 4 }
  0x94   :  { %v60_v27 = vpop.xlane.xlu0 %59 }
  0x95   :  { %v53_v28 = vrot.slane %v52_v26, 2  ;;  %v61_v29 = vrot.slane %v60_v27, 4  ;;  %v90_v52 = vadd.f32 %v89_v44, %v88_v40 }
  0x96   :  { %v37_v50 = vpop.xlane.xlu1 %36 }
  0x97   :  { %v54_v30 = vadd.f32 %v53_v28, %v52_v26  ;;  %v62_v31 = vadd.f32 %v61_v29, %v60_v27  ;;  %v38_v53 = vrot.slane %v37_v50, 4  ;;  %v91_v55 = vrot.slane %v90_v52, 2 }
  0x99   :  { %v55_v32 = vrot.slane %v54_v30, 1  ;;  %v63_v33 = vrot.slane %v62_v31, 2  ;;  %v39_v56 = vadd.f32 %v38_v53, %v37_v50  ;;  %v92_v57 = vadd.f32 %v91_v55, %v90_v52 }
  0x9b   :  { %v56_v34 = vadd.f32 %v55_v32, %v54_v30  ;;  %v64_v35 = vadd.f32 %v63_v33, %v62_v31  ;;  %v40_v58 = vrot.slane %v39_v56, 2  ;;  %v93_v60 = vrot.slane %v92_v57, 1 }
  0x9d   :  { %127 = vrsqrt.f32 %v56_v34  ;;  %v65_v36 = vrot.slane %v64_v35, 1  ;;  %vm69_vm1 = vcmp.eq.f32.partialorder %v56_v34, inf  ;;  %v72_v45 = vand.u32 2147483648, %v56_v34 }
  0x9e   :  { %vm71_vm3 = vcmp.eq.f32.partialorder %v56_v34, 0.0  ;;  %v41_v61 = vadd.f32 %v40_v58, %v39_v56  ;;  %v94_v62 = vadd.f32 %v93_v60, %v92_v57 }
  0x9f   :  { %v66_v37 = vadd.f32 %v65_v36, %v64_v35 }
  0xa0   :  { %v42_v1 = vrot.slane %v41_v61, 1 }
  0xa1   :  { %129 = vrsqrt.f32 %v66_v37  ;;  %vm76_vm2 = vcmp.eq.f32.partialorder %v66_v37, inf  ;;  %v79_v46 = vand.u32 2147483648, %v66_v37  ;;  %vm78_vm4 = vcmp.eq.f32.partialorder %v66_v37, 0.0 }
  0xa2   :  { %v43_v3 = vadd.f32 %v42_v1, %v41_v61 }
  0xa4   :  { %v44_v6 = vmul.f32 4.0, %v43_v3 }
  0xaa   :  { %v128_v38 = vpop.eup %127 }
  0xab   :  { %v68_v39 = vmul.f32 %v128_v38, %v56_v34 }
  0xad   :  { %v70_v42 = vsel %vm69_vm1, %v56_v34, %v68_v39 }
  0xae   :  { %v130_v41 = vpop.eup %129  ;;  %v73_v49 = vsel %vm71_vm3, %v72_v45, %v70_v42 }
  0xaf   :  { %v75_v43 = vmul.f32 %v130_v41, %v66_v37 }
  0xb1   :  { %v77_v47 = vsel %vm76_vm2, %v66_v37, %v75_v43 }
  0xb2   :  { %v80_v48 = vsel %vm78_vm4, %v79_v46, %v77_v47 }
  0xb3   :  { %v81_v51 = vmul.f32 %v80_v48, %v73_v49 }
  0xb5   :  { %vm82_vm5 = vcmp.eq.f32.partialorder %v81_v51, 0.0 }
  0xb6   :  { %v83_v54 = vsel %vm82_vm5, 0.0001, %v81_v51 }
  0xb7   :  { %131 = vrcp.f32 %v83_v54 }
  0xb8   :  { %133 = vrcp.f32 %v103_v59 }
  0xc4   :  { %v132_v63 = vpop.eup %131 }
  0xc5   :  { %v96_v0 = vmul.f32 %v132_v63, %v94_v62  ;;  %v134_v8 = vpop.eup %133 }
  0xc7   :  { %v97_v2 = vand.u32 2147483647, %v96_v0 }
  0xc9   :  { %v98_v4 = vsub.f32 1.0, %v97_v2 }
  0xcb   :  { %v99_v5 = vand.u32 2147483647, %v98_v4 }
  0xcd   :  { %v100_v7 = vmul.f32 %v99_v5, %v99_v5 }
  0xcf   :  { %v101_v9 = vadd.f32 %v100_v7, %v44_v6 }
  0xd1   :  { %v105_v10 = vmul.f32 %v134_v8, %v101_v9 }
  0xd3   :  { %107 = vst.msk [vmem:[#allocation3] sm:$0x1] %vm106_vm6, %v105_v10 }
  0xd4   :  { %146 = shalt.err (!%p143_p4)
}
  0xd5   :  { %117 = dma.vmem_to_hbm [thread:$0]  %s115_s25, 16, %s209_s3, [#allocation4]  }
  0xd6   :  { %155 = dma.done.wait [#allocation4], 16  }
  0xd7   :  { %156 = vsyncadd [#allocation4], 4294967280 }
  0xd8   :  { %121 = vsyncpa [#allocation4], 1 }

</bundles_post_ra>
